<compile_context>
chip_gen: v6e
topology: v6e:2x2x1
jax: 0.10.0
libtpu: 0.0.40
codegen_flags: <defaults>
</compile_context>

<pallas_src>
import jax
import jax.numpy as jnp
from jax.experimental import pallas as pl
from jax.experimental.pallas import tpu as pltpu


# ----------------------------------------------------------------------------
# Device detection (per-generation tuning knobs)
# ----------------------------------------------------------------------------
def _device_kind():
    try:
        return jax.devices()[0].device_kind.lower()
    except Exception:
        return ""


_DEVICE_KIND = _device_kind()
_IS_V5 = "v5" in _DEVICE_KIND   # no bf16 VPU -> keep GELU in f32
_IS_V7 = "v7" in _DEVICE_KIND   # 64 MiB VMEM / 2 TCs per chip


def _round_up(x, m):
    return (x + m - 1) // m * m


def _pick_hidden_chunk(h_pad, target):
    """Largest multiple of 128 <= target that divides h_pad (h_pad % 128 == 0)."""
    target = max(128, _round_up(int(target), 128))
    if h_pad <= target:
        return h_pad
    for c in range(target, 127, -128):
        if h_pad % c == 0:
            return c
    return 128


# ----------------------------------------------------------------------------
# Kernel
# ----------------------------------------------------------------------------
def _gelu_tanh(x):
    # TODO(synk): nn.GELU's default is the exact erf form; the tanh
    # approximation (max abs deviation ~3e-3) is used for guaranteed Mosaic
    # lowering (tanh runs on the EUP, nearly free).
    # Factored form: inner = x*(c + c*0.044715*x^2) with folded constants.
    x2 = x * x
    inner = x * (0.7978845608028654 + 0.035677408136300125 * x2)
    return 0.5 * x * (1.0 + jnp.tanh(inner))


def _make_mlp_kernel(n_chunks, h_chunk, gelu_dtype):
    def kernel(x_ref, w1_ref, b1_ref, w2_ref, b2_ref, o_ref, acc_ref):
        # x_ref: (tm, D)   w1_ref: (D, H)   b1_ref: (1, H)
        # w2_ref: (H, O)   b2_ref: (1, O)   o_ref: (tm, O)
        # acc_ref: (tm, O) f32 VMEM scratch (GEMM2 accumulator)
        x = x_ref[...]
        # Static unroll over H chunks: all slice offsets are compile-time
        # constants (zero-cost ref views); chunking lets GELU of one chunk
        # overlap the MXU work of adjacent chunks instead of serializing
        # GEMM1 -> GELU -> GEMM2 over the full hidden dim.
        for c in range(n_chunks):
            lo = c * h_chunk
            hi = lo + h_chunk
            h = jnp.dot(x, w1_ref[:, lo:hi],
                        preferred_element_type=jnp.float32)
            # bias + GELU in bf16 on v6e/v7x (bf16 VALUs), f32 on v5e.
            h = _gelu_tanh(h.astype(gelu_dtype) + b1_ref[:, lo:hi])
            part = jnp.dot(h.astype(w2_ref.dtype), w2_ref[lo:hi, :],
                           preferred_element_type=jnp.float32)
            if c == 0:
                acc_ref[...] = part
            else:
                acc_ref[...] += part
        # TODO(synk): Dropout with p > 0 would need pltpu.prng_*; p = 0.0
        # (the module default) is an identity and is omitted.
        o_ref[...] = (acc_ref[...] + b2_ref[...]).astype(o_ref.dtype)

    return kernel


# ----------------------------------------------------------------------------
# One-time parameter preprocessing (hoisted off the per-call path)
# ----------------------------------------------------------------------------
def prepare_mlp_params(w1, b1, w2, b2, *, weight_dtype=jnp.bfloat16,
                       gelu_dtype=None):
    """Transpose to (in, out), zero-pad feature dims to multiples of 128 and
    cast once.  Zero padding keeps the math exact; padding is sliced off."""
    if gelu_dtype is None:
        gelu_dtype = jnp.float32 if _IS_V5 else jnp.bfloat16
    H, D = w1.shape
    O, H2 = w2.shape
    assert H2 == H and b1.shape == (H,) and b2.shape == (O,)

    D_pad = _round_up(D, 128)
    H_pad = _round_up(H, 128)
    O_pad = _round_up(O, 128)

    w1_p = jnp.pad(w1.T, ((0, D_pad - D), (0, H_pad - H))).astype(weight_dtype)
    w2_p = jnp.pad(w2.T, ((0, H_pad - H), (0, O_pad - O))).astype(weight_dtype)
    b1_p = jnp.pad(b1, (0, H_pad - H)).reshape(1, H_pad).astype(gelu_dtype)
    b2_p = jnp.pad(b2, (0, O_pad - O)).reshape(1, O_pad).astype(jnp.float32)

    return dict(w1=w1_p, b1=b1_p, w2=w2_p, b2=b2_p,
                D=D, H=H, O=O, D_pad=D_pad, H_pad=H_pad, O_pad=O_pad,
                gelu_dtype=gelu_dtype, weight_dtype=weight_dtype)


# ----------------------------------------------------------------------------
# Forward
# ----------------------------------------------------------------------------
def mlp_forward(x, params, *, row_tile=512, hidden_chunk=512, out_dtype=None):
    """Fused MLP forward.  x: (..., D_in) -> (..., D_out)."""
    lead_shape = x.shape[:-1]
    D = x.shape[-1]
    assert D == params["D"], (D, params["D"])
    O = params["O"]
    D_pad, H_pad, O_pad = params["D_pad"], params["H_pad"], params["O_pad"]
    gelu_dtype = params["gelu_dtype"]
    weight_dtype = params["weight_dtype"]
    out_dtype = x.dtype if out_dtype is None else jnp.dtype(out_dtype)

    M = 1
    for s in lead_shape:
        M *= s

    # Row tile: multiple of 8 sublanes (defensive rounding of user input).
    row_tile = max(8, _round_up(int(row_tile), 8))
    tm = min(row_tile, _round_up(M, 8))
    if _round_up(M, tm) // tm < 2:
        # Guarantee >= 2 grid steps when possible so "parallel" can shard the
        # row axis across both v7x TensorCores (no-op on v5e/v6e).
        tm = max(8, _round_up(pl.cdiv(M, 2), 8))
    M_pad = _round_up(M, tm)
    grid = (M_pad // tm,)

    h_chunk = _pick_hidden_chunk(H_pad, hidden_chunk)
    n_chunks = H_pad // h_chunk

    x_p = jnp.pad(x.reshape(M, D).astype(weight_dtype),
                  ((0, M_pad - M), (0, D_pad - D)))

    kernel = _make_mlp_kernel(n_chunks, h_chunk, gelu_dtype)

    w_bytes = jnp.dtype(weight_dtype).itemsize
    gelu_bytes = jnp.dtype(gelu_dtype).itemsize
    out_bytes = jnp.dtype(out_dtype).itemsize

    cost = pl.CostEstimate(
        flops=2 * M_pad * D_pad * H_pad + 2 * M_pad * H_pad * O_pad,
        transcendentals=M_pad * H_pad,
        bytes_accessed=(M_pad * D_pad + D_pad * H_pad + H_pad * O_pad) * w_bytes
        + H_pad * gelu_bytes + O_pad * 4 + M_pad * O_pad * out_bytes,
    )

    def build_call(single_buffer_weights):
        def const_spec(shape):
            # Weights / biases: constant block index -> VMEM resident.
            if single_buffer_weights:
                return pl.BlockSpec(shape, lambda i: (0, 0),
                                    pipeline_mode=pl.Buffered(1))
            return pl.BlockSpec(shape, lambda i: (0, 0))

        # --- VMEM budget (per generation, with headroom) --------------------
        wbuf = 1 if single_buffer_weights else 2
        resident = wbuf * ((D_pad * H_pad + H_pad * O_pad) * w_bytes
                           + H_pad * gelu_bytes + O_pad * 4)
        per_step = 2 * tm * (D_pad * w_bytes + O_pad * out_bytes)  # dbl-buffered tiles
        transient = tm * O_pad * 4 + tm * h_chunk * (4 + gelu_bytes + w_bytes)
        vmem_bytes = resident + per_step + transient + (4 << 20)
        ceiling = (52 << 20) if _IS_V7 else (100 << 20)
        vmem_bytes = int(min(max(vmem_bytes, 16 << 20), ceiling))

        return pl.pallas_call(
            kernel,
            out_shape=jax.ShapeDtypeStruct((M_pad, O_pad), out_dtype),
            grid_spec=pltpu.PrefetchScalarGridSpec(
                num_scalar_prefetch=0,
                grid=grid,
                in_specs=[
                    pl.BlockSpec((tm, D_pad), lambda i: (i, 0)),   # x row tile
                    const_spec((D_pad, H_pad)),                    # W1 (resident)
                    const_spec((1, H_pad)),                        # b1 (resident)
                    const_spec((H_pad, O_pad)),                    # W2 (resident)
                    const_spec((1, O_pad)),                        # b2 (resident)
                ],
                out_specs=pl.BlockSpec((tm, O_pad), lambda i: (i, 0)),
                scratch_shapes=[pltpu.VMEM((tm, O_pad), jnp.float32)],
            ),
            compiler_params=pltpu.CompilerParams(
                dimension_semantics=("parallel",),
                vmem_limit_bytes=vmem_bytes,
            ),
            cost_estimate=cost,
        )

    args = (x_p, params["w1"], params["b1"], params["w2"], params["b2"])
    if _IS_V7:
        try:
            out = build_call(True)(*args)      # single-buffered resident weights
        except Exception:                      # pl.Buffered(1) unsupported -> fallback
            out = build_call(False)(*args)
    else:
        out = build_call(False)(*args)

    return out[:M, :O].reshape(*lead_shape, O)


# ----------------------------------------------------------------------------
# Module wrapper
# ----------------------------------------------------------------------------
class MlpPallas:
    """DeiT Mlp (fc1 -> GELU -> drop -> fc2 -> drop) backed by a fused Pallas kernel."""

    def __init__(self, in_features, hidden_features=None, out_features=None,
                 drop=0.0, key=jax.random.PRNGKey(0)):
        out_features = out_features or in_features
        hidden_features = hidden_features or in_features
        self.drop = drop  # p = 0.0 -> identity (see kernel TODO)

        k1, k2, k3, k4 = jax.random.split(key, 4)
        # nn.Linear default init: U(-1/sqrt(fan_in), 1/sqrt(fan_in))
        bnd1 = 1.0 / (in_features ** 0.5)
        bnd2 = 1.0 / (hidden_features ** 0.5)
        self.w1 = jax.random.uniform(k1, (hidden_features, in_features),
                                     minval=-bnd1, maxval=bnd1, dtype=jnp.float32)
        self.b1 = jax.random.uniform(k2, (hidden_features,),
                                     minval=-bnd1, maxval=bnd1, dtype=jnp.float32)
        self.w2 = jax.random.uniform(k3, (out_features, hidden_features),
                                     minval=-bnd2, maxval=bnd2, dtype=jnp.float32)
        self.b2 = jax.random.uniform(k4, (out_features,),
                                     minval=-bnd2, maxval=bnd2, dtype=jnp.float32)

        # One-time weight prep (transpose / pad / cast) hoisted off the
        # per-call path.
        self.params = prepare_mlp_params(self.w1, self.b1, self.w2, self.b2)

    def __call__(self, x, out_dtype=None):
        return mlp_forward(x, self.params, out_dtype=out_dtype)


if __name__ == "__main__":
    key = jax.random.PRNGKey(0)
    k_x, k_params = jax.random.split(key)

    B, N, D_in, D_hidden = 2, 8, 32, 64
    x = jax.random.normal(k_x, (B, N, D_in), dtype=jnp.float32)

    mlp = MlpPallas(in_features=D_in, hidden_features=D_hidden, key=k_params)
    out = jax.block_until_ready(mlp(x))

    # Reference: same bf16 quantization of x / weights / GEMM2 input, f32 math.
    xb = x.astype(jnp.bfloat16).astype(jnp.float32)
    w1b = mlp.w1.astype(jnp.bfloat16).astype(jnp.float32)
    w2b = mlp.w2.astype(jnp.bfloat16).astype(jnp.float32)
    h = _gelu_tanh(xb @ w1b.T + mlp.b1)
    h = h.astype(jnp.bfloat16).astype(jnp.float32)   # GEMM2 is fed bf16 in-kernel
    ref = h @ w2b.T + mlp.b2

    assert out.shape == (B, N, D_in), out.shape
    err = float(jnp.max(jnp.abs(out - ref)))
    assert jnp.allclose(out, ref, atol=2e-2, rtol=2e-2), f"max abs err {err}"

    print("KERNEL_OK")
</pallas_src>

<mosaic_0001>
module attributes {stable_mosaic.version = 11 : i64} {
  func.func @kernel(%arg0: i32, %arg1: memref<8x128xbf16, #tpu.memory_space<vmem>>, %arg2: memref<128x128xbf16, #tpu.memory_space<vmem>>, %arg3: memref<1x128xbf16, #tpu.memory_space<vmem>>, %arg4: memref<128x128xbf16, #tpu.memory_space<vmem>>, %arg5: memref<1x128xf32, #tpu.memory_space<vmem>>, %arg6: memref<8x128xf32, #tpu.memory_space<vmem>>, %arg7: memref<8x128xf32, #tpu.memory_space<vmem>>) attributes {dimension_semantics = [#tpu.dimension_semantics<parallel>], iteration_bounds = array<i64: 2>, scalar_prefetch = 0 : i64, scratch_operands = 1 : i64, tpu.core_type = #tpu.core_type<tc>, window_params = [{transform_indices = @transform_0, window_bounds = array<i64: 8, 128>}, {pipeline_mode = #tpu.pipeline_mode<synchronous>, transform_indices = @transform_1, window_bounds = array<i64: 128, 128>}, {pipeline_mode = #tpu.pipeline_mode<synchronous>, transform_indices = @transform_2, window_bounds = array<i64: 1, 128>}, {pipeline_mode = #tpu.pipeline_mode<synchronous>, transform_indices = @transform_3, window_bounds = array<i64: 128, 128>}, {pipeline_mode = #tpu.pipeline_mode<synchronous>, transform_indices = @transform_4, window_bounds = array<i64: 1, 128>}, {transform_indices = @transform_5, window_bounds = array<i64: 8, 128>}]} {
    %c0 = arith.constant 0 : index
    %c0_0 = arith.constant 0 : index
    %0 = vector.load %arg1[%c0, %c0_0] : memref<8x128xbf16, #tpu.memory_space<vmem>>, vector<8x128xbf16>
    %c0_1 = arith.constant 0 : index
    %c0_2 = arith.constant 0 : index
    %1 = vector.load %arg2[%c0_1, %c0_2] : memref<128x128xbf16, #tpu.memory_space<vmem>>, vector<128x128xbf16>
    %cst = arith.constant dense<0.000000e+00> : vector<8x128xf32>
    %2 = tpu.matmul %0, %1, %cst {dimension_numbers = #tpu.dot_dimension_numbers<[1], [0], [0], [1], [0, 0, 1, 1], [], []>} : vector<8x128xbf16>, vector<128x128xbf16>, vector<8x128xf32> -> vector<8x128xf32>
    %3 = arith.truncf %2 : vector<8x128xf32> to vector<8x128xbf16>
    %c0_3 = arith.constant 0 : index
    %c0_4 = arith.constant 0 : index
    %4 = vector.load %arg3[%c0_3, %c0_4] : memref<1x128xbf16, #tpu.memory_space<vmem>>, vector<1x128xbf16>
    %5 = vector.broadcast %4 : vector<1x128xbf16> to vector<8x128xbf16>
    %6 = arith.addf %3, %5 : vector<8x128xbf16>
    %7 = arith.mulf %6, %6 : vector<8x128xbf16>
    %cst_5 = arith.constant 3.564450e-02 : bf16
    %8 = vector.broadcast %cst_5 : bf16 to vector<8x128xbf16>
    %9 = arith.mulf %8, %7 : vector<8x128xbf16>
    %cst_6 = arith.constant 7.968750e-01 : bf16
    %10 = vector.broadcast %cst_6 : bf16 to vector<8x128xbf16>
    %11 = arith.addf %10, %9 : vector<8x128xbf16>
    %12 = arith.mulf %6, %11 : vector<8x128xbf16>
    %cst_7 = arith.constant 5.000000e-01 : bf16
    %13 = vector.broadcast %cst_7 : bf16 to vector<8x128xbf16>
    %14 = arith.mulf %13, %6 : vector<8x128xbf16>
    %15 = math.tanh %12 : vector<8x128xbf16>
    %cst_8 = arith.constant 1.000000e+00 : bf16
    %16 = vector.broadcast %cst_8 : bf16 to vector<8x128xbf16>
    %17 = arith.addf %16, %15 : vector<8x128xbf16>
    %18 = arith.mulf %14, %17 : vector<8x128xbf16>
    %c0_9 = arith.constant 0 : index
    %c0_10 = arith.constant 0 : index
    %19 = vector.load %arg4[%c0_9, %c0_10] : memref<128x128xbf16, #tpu.memory_space<vmem>>, vector<128x128xbf16>
    %cst_11 = arith.constant dense<0.000000e+00> : vector<8x128xf32>
    %20 = tpu.matmul %18, %19, %cst_11 {dimension_numbers = #tpu.dot_dimension_numbers<[1], [0], [0], [1], [0, 0, 1, 1], [], []>} : vector<8x128xbf16>, vector<128x128xbf16>, vector<8x128xf32> -> vector<8x128xf32>
    %c0_12 = arith.constant 0 : index
    %c0_13 = arith.constant 0 : index
    %21 = vector.load %arg7[%c0_12, %c0_13] : memref<8x128xf32, #tpu.memory_space<vmem>>, vector<8x128xf32>
    tpu.vector_store %arg7[%c0_12, %c0_13], %20 {strides = array<i32>} : memref<8x128xf32, #tpu.memory_space<vmem>>, vector<8x128xf32>,
    %c0_14 = arith.constant 0 : index
    %c0_15 = arith.constant 0 : index
    %22 = vector.load %arg7[%c0_14, %c0_15] : memref<8x128xf32, #tpu.memory_space<vmem>>, vector<8x128xf32>
    %c0_16 = arith.constant 0 : index
    %c0_17 = arith.constant 0 : index
    %23 = vector.load %arg5[%c0_16, %c0_17] : memref<1x128xf32, #tpu.memory_space<vmem>>, vector<1x128xf32>
    %24 = vector.broadcast %23 : vector<1x128xf32> to vector<8x128xf32>
    %25 = arith.addf %22, %24 : vector<8x128xf32>
    %c0_18 = arith.constant 0 : index
    %c0_19 = arith.constant 0 : index
    %26 = vector.load %arg6[%c0_18, %c0_19] : memref<8x128xf32, #tpu.memory_space<vmem>>, vector<8x128xf32>
    tpu.vector_store %arg6[%c0_18, %c0_19], %25 {strides = array<i32>} : memref<8x128xf32, #tpu.memory_space<vmem>>, vector<8x128xf32>,
    return
  }
  func.func @transform_0(%arg0: i32) -> (i32, i32) {
    %c0_i32 = arith.constant 0 : i32
    %c0_i32_0 = arith.constant 0 : i32
    return %arg0, %c0_i32 : i32, i32
  }
  func.func @transform_1(%arg0: i32) -> (i32, i32) {
    %c0_i32 = arith.constant 0 : i32
    %c0_i32_0 = arith.constant 0 : i32
    %c0_i32_1 = arith.constant 0 : i32
    return %c0_i32, %c0_i32_0 : i32, i32
  }
  func.func @transform_2(%arg0: i32) -> (i32, i32) {
    %c0_i32 = arith.constant 0 : i32
    %c0_i32_0 = arith.constant 0 : i32
    %c0_i32_1 = arith.constant 0 : i32
    return %c0_i32, %c0_i32_0 : i32, i32
  }
  func.func @transform_3(%arg0: i32) -> (i32, i32) {
    %c0_i32 = arith.constant 0 : i32
    %c0_i32_0 = arith.constant 0 : i32
    %c0_i32_1 = arith.constant 0 : i32
    return %c0_i32, %c0_i32_0 : i32, i32
  }
  func.func @transform_4(%arg0: i32) -> (i32, i32) {
    %c0_i32 = arith.constant 0 : i32
    %c0_i32_0 = arith.constant 0 : i32
    %c0_i32_1 = arith.constant 0 : i32
    return %c0_i32, %c0_i32_0 : i32, i32
  }
  func.func @transform_5(%arg0: i32) -> (i32, i32) {
    %c0_i32 = arith.constant 0 : i32
    %c0_i32_0 = arith.constant 0 : i32
    return %arg0, %c0_i32 : i32, i32
  }
}

</mosaic_0001>

<bundles_post_ra>
// kernel: tpu_custom_call.1
= control target key start
LH: loop header
LB: loop body
LE: loop exit
PB: predicated region body
PF: predicated region fallthrough
CT: control target
= control target key end

     0   :  { %10 = vsyncpa [#allocation4], 0  ;;  %s1170_s0 = inlined_call_operand.hbm [shape: bf16[16,128], index: 0, kind: input, shape index: {}]   ;;  %s1171_s1 = inlined_call_operand.hbm [shape: bf16[128,128], index: 1, kind: input, shape index: {}]   ;;  %s1172_s2 = inlined_call_operand.vmem [shape: bf16[1,128], index: 2, kind: input, shape index: {}]   ;;  %s1173_s3 = inlined_call_operand.hbm [shape: bf16[128,128], index: 3, kind: input, shape index: {}]   ;;  %s1174_s4 = inlined_call_operand.vmem [shape: f32[1,128], index: 4, kind: input, shape index: {}]   ;;  %s1175_s5 = inlined_call_operand.hbm [shape: f32[16,128], index: 5, kind: output, shape index: {}]  }
   0x1   :  { %12 = vsyncpa [#allocation4 + $0x1], 0 }
   0x2   :  { %13 = vsyncpa [#allocation7], 0 }
   0x3   :  { %14 = vsyncpa [#allocation5], 0 }
   0x4   :  { %16 = vsyncpa [#allocation5 + $0x1], 0  ;;  %s983_s18 = smov 0   ;;  %s985_s19 = smov 0  }
   0x5   :  { %s987_s20 = smov 0   ;;  %s989_s21 = smov 0  }
   0x6 LB: > { %s1004_s22 = sadd.s32 4294967295, %s943_s21   ;;  %s615_s23 = sadd.s32 4294967294, %s943_s21   ;;  %s943_s21 = sphi %s989_s21, %s1197_s21   ;;  %s939_s20 = sphi %s987_s20, %s1196_s20   ;;  %s935_s19 = sphi %s985_s19, %s1195_s19   ;;  %s931_s18 = sphi %s983_s18, %s1194_s18  }
   0x7   : > { %p42_p0 = scmp.ne.s32.totalorder %s935_s19, %s931_s18  ;;  %p1176_p1 = scmp.eq.s32.totalorder %s1004_s22, 0 }
   0x8   : > { %p156_p3 = scmp.eq.s32.totalorder %s615_s23, 1  ;;  %p616_p5 = scmp.ge.s32.totalorder %s943_s21, 1 }
   0x9   : > { %p1013_p4 = por %p1176_p1, %p42_p0  ;;  %p163_p7 = scmp.lt.s32.totalorder %s943_s21, 3 }
   0xa   : > { %p1018_p6 = por %p156_p3, %p42_p0  ;;  %s945_s27 = smov [#allocation6]  }
   0xb   : > { %s1180_s24 = scalar_select %p1013_p4, 1, 0 }
   0xc   : > { %s1181_s25 = scalar_select %p1018_p6, 1, 0 }
   0xd   : > { %p1023_p8 = pnand %p616_p5, %p163_p7  ;;  %s175_s28 = sshll.u32 %s945_s27, 4  ;;  %s176_s28 = int_to_ptr.vmem [resolvable:$true] %s175_s28 }
   0xe   : > { %s946_s30 = smov [#allocation8]   ;;  %s806_s7 = scalar_lea.vmem %s176_s28, 1024 }
   0xf   : > { %s1182_s26 = scalar_select %p1023_p8, 1, 0 }
  0x10   : > { %p718_p9 = pneg %p1023_p8  ;;  %s191_s6 = sshll.u32 %s946_s30, 4  ;;  %s192_s6 = int_to_ptr.vmem [resolvable:$true] %s191_s6 }
  0x11   : > { %p807_p13 = scmp.ne.s32.totalorder %s176_s28, %s806_s7  ;;  %p814_p5 = scmp.lt.s32.totalorder %s176_s28, %s176_s28 }
  0x12   : > { %p1032_p11 = pnand %p718_p9, %p1176_p1  ;;  %p815_p7 = scmp.lt.s32.totalorder %s806_s7, %s806_s7 }
  0x14   : > { %p797_p12 = pneg %p1032_p11  ;;  %p816_p10 = por %p815_p7, %p814_p5 }
  0x16   : > { %p809_p0 = pnand %p807_p13, %p797_p12 }
  0x18   : > { %p810_p3 = pneg %p809_p0 }
  0x1a   : > { %p817_p9 = pnand %p816_p10, %p810_p3 }
  0x1c   : > { %820 = shalt.err (!%p817_p9)
}
  0x1d   : > { %s947_s8 = smov 64   ;;  %s948_s9 = smov 4  }
  0x1e   : > { %721 = dma.hbm_to_vmem [thread:$0]  (!%p1032_p11), %s1171_s1, 1024, %s176_s28, [#allocation7], %s947_s8, %s947_s8, %s948_s9  }
  0x1f   : > { %s832_s12 = scalar_lea.vmem %s192_s6, 1024  ;;  %p840_p2 = scmp.lt.s32.totalorder %s192_s6, %s192_s6 }
  0x20   : > { %p833_p1 = scmp.ne.s32.totalorder %s192_s6, %s832_s12  ;;  %p841_p6 = scmp.lt.s32.totalorder %s832_s12, %s832_s12 }
  0x22   : > { %p835_p13 = pnand %p833_p1, %p797_p12  ;;  %p842_p5 = por %p841_p6, %p840_p2 }
  0x24   : > { %p836_p0 = pneg %p835_p13 }
  0x26   : > { %p843_p10 = pnand %p842_p5, %p836_p0 }
  0x28   : > { %846 = shalt.err (!%p843_p10)
}
  0x29   : > { %724 = dma.hbm_to_vmem [thread:$0]  (!%p1032_p11), %s1173_s3, 1024, %s192_s6, [#allocation7], %s947_s8, %s947_s8, %s948_s9  }
  0x2a   : > { %s1055_s15 = sadd.s32 1, %s943_s21   ;;  %s29_s16 = sadd.s32 1, %s939_s20 }
  0x2b   : > { %s26_s17 = ssub.s32 %s943_s21, %s1055_s15  ;;  %p36_p1 = scmp.ne.s32.totalorder %s939_s20, %s935_s19 }
  0x2c   : > { %p27_p2 = scmp.eq.s32.totalorder %s26_s17, 0  ;;  %p37_p6 = scmp.eq.s32.totalorder %s943_s21, 0 }
  0x2d   : > { %p1184_p12 = scmp.eq.s32.totalorder %s1004_s22, 1  ;;  %p735_p7 = scmp.lt.s32.totalorder %s943_s21, 2 }
  0x2e   : > { %s1071_s27 = scalar_select %p27_p2, %s939_s20, %s29_s16  }
  0x2f   : > { %p1065_p3 = por %p1184_p12, %p36_p1  ;;  %p38_p9 = por %p37_p6, %p36_p1 }
  0x30   : > { %s208_s28 = sand.u32 1, %s939_s20   ;;  %s621_s30 = sshll.u32 %s943_s21, 6 }
  0x31   : > { %s1185_s23 = scalar_select %p1065_p3, 1, 0 }
  0x32   : > { %s620_s29 = sshll.u32 %s208_s28, 2  ;;  %s1078_s8 = scalar_lea.hbm %s1170_s0, %s621_s30 }
  0x33   : > { %s212_s9 = scalar_lea.vmem [#allocation3], %s620_s29  ;;  %p1080_p11 = pnand %p735_p7, %p38_p9 }
  0x34   : > { %s219_s10 = sshll.u32 %s212_s9, 4  ;;  %s209_s12 = scalar_lea.sflag [#allocation4], %s208_s28  ;;  %s220_s10 = int_to_ptr.vmem [resolvable:$true] %s219_s10 }
  0x35   : > { %s847_s13 = scalar_lea.hbm %s1078_s8, 64  ;;  %p849_p0 = pneg %p1080_p11 }
  0x36   : > { %p848_p13 = scmp.ne.s32.totalorder %s1078_s8, %s847_s13  ;;  %s852_s17 = scalar_lea.hbm %s1170_s0, 128 }
  0x37   : > { %p853_p1 = scmp.lt.s32.totalorder %s1078_s8, %s1170_s0  ;;  %p854_p2 = scmp.lt.s32.totalorder %s852_s17, %s847_s13 }
  0x38   : > { %p850_p5 = pnand %p849_p0, %p848_p13 }
  0x39   : > { %p855_p6 = por %p854_p2, %p853_p1 }
  0x3a   : > { %p851_p10 = pneg %p850_p5 }
  0x3c   : > { %p856_p12 = pnand %p855_p6, %p851_p10 }
  0x3e   : > { %859 = shalt.err (!%p856_p12)
}
  0x3f   : > { %s860_s6 = scalar_lea.vmem %s220_s10, 64  ;;  %s949_s28 = smov [#allocation3]  }
  0x40   : > { %p861_p7 = scmp.ne.s32.totalorder %s220_s10, %s860_s6  ;;  %s865_s7 = sshll.u32 %s949_s28, 4  ;;  %s866_s7 = int_to_ptr.vmem [resolvable:$false] %s865_s7 }
  0x41   : > { %s867_s9 = scalar_lea.vmem %s866_s7, 128  ;;  %p868_p13 = scmp.lt.s32.totalorder %s220_s10, %s866_s7 }
  0x42   : > { %p863_p9 = pnand %p861_p7, %p849_p0  ;;  %p869_p5 = scmp.lt.s32.totalorder %s867_s9, %s860_s6 }
  0x44   : > { %p864_p3 = pneg %p863_p9  ;;  %p870_p4 = por %p869_p5, %p868_p13 }
  0x46   : > { %p871_p8 = pnand %p870_p4, %p864_p3 }
  0x48   : > { %874 = shalt.err (!%p871_p8)
}
  0x49   : > { %728 = dma.hbm_to_vmem [thread:$0]  (!%p1080_p11), %s1078_s8, 64, %s220_s10, %s209_s12  }
  0x4a   : > { %p1187_p10 = scmp.ne.s32.totalorder %s1182_s26, 0 }
  0x4b   : > { %s1101_s13 = sand.u32 (!%p1187_p10), 1, %s935_s19   ;;  %p1188_p0 = scmp.ne.s32.totalorder (!%p1187_p10), %s1180_s24, 0 }
  0x4c   : > { %228 = sbr.rel (%p1187_p10) target bundleno = 552 (0x228), region = 40  ;;  %s623_s14 = sshll.u32 (!%p1187_p10), %s1101_s13, 2 }
  0x4d   : > { %s231_s16 = scalar_lea.sflag (!%p1187_p10), [#allocation4], %s1101_s13  ;;  %s1105_s17 = scalar_lea.vmem (!%p1187_p10), [#allocation3], %s623_s14 }
  0x51   : > { %918 = dma.done.wait (%p1188_p0), %s231_s16, 64  }
  0x52   : > { %920 = vsyncadd (%p1188_p0), %s231_s16, 4294967232  ;;  %p1189_p4 = scmp.eq.s32.totalorder %s1004_s22, 0 }
  0x54   : > { %922 = dma.done.wait (%p1189_p4), [#allocation7], 2048   ;;  %p1190_p8 = pmov %p1189_p4 }
  0x55   : > { %v950_v0 = vmov 0.0   ;;  %vm951_vm0 = vmmov 0   ;;  %v777_v1 = vld [vmem:[#allocation6 + $0x38] sm:$0xff]   ;;  %v778_v2 = vld [vmem:[#allocation6 + $0x30] sm:$0xff]   ;;  %v779_v3 = vld [vmem:[#allocation6 + $0x28] sm:$0xff]   ;;  %v384_v18 = vlaneseq  ;;  %s626_s8 = sshll.u32 %s1101_s13, 3 }
  0x56   : > { %924 = vsyncadd (%p1190_p8), [#allocation7], 4294965248  ;;  %666 = vmatprep.subr.bf16.mxu0 %v950_v0  ;;  %682 = vmatprep.mubr.msk.bf16.mxu0 %vm951_vm0, %v950_v0  ;;  %v780_v4 = vld [vmem:[#allocation6 + $0x20] sm:$0xff]   ;;  %v781_v5 = vld [vmem:[#allocation6 + $0x18] sm:$0xff]   ;;  %s645_s12 = sshll.u32 %s1004_s22, 7  ;;  %s268_s30 = scalar_lea.vmem [#allocation9], %s626_s8 }
  0x57   : > { %686 = vmatprep.subr.bf16.mxu1 %v950_v0  ;;  %702 = vmatprep.mubr.msk.bf16.mxu1 %vm951_vm0, %v950_v0  ;;  %v782_v6 = vld [vmem:[#allocation6 + $0x10] sm:$0xff]   ;;  %v783_v7 = vld [vmem:[#allocation6 + $0x8] sm:$0xff]   ;;  %v784_v8 = vld [vmem:[#allocation6] sm:$0xff]   ;;  %v385_v19 = vshrl.u32 %v384_v18, 7  ;;  %s526_s29 = sshll.u32 %s268_s30, 4  ;;  %s1127_s7 = scalar_lea.hbm %s1175_s5, %s645_s12  ;;  %s1129_s29 = int_to_ptr.vmem [resolvable:$true] %s526_s29 }
  0x58   : > { %667 = vmatpush3.bf16.msra.mxu0 %v777_v1  ;;  %v274_v9 = vld [vmem:[%s1105_s17] sm:$0xf]  ;;  %v786_v11 = vld [vmem:[#allocation8 + $0x30] sm:$0xff]   ;;  %v787_v12 = vld [vmem:[#allocation8 + $0x28] sm:$0xff]   ;;  %s513_s9 = scalar_lea.sflag [#allocation5], %s1101_s13  ;;  %s875_s14 = scalar_lea.vmem %s1129_s29, 128 }
  0x59   : > { %668 = vmatprep.subr.bf16.mxu0 %v950_v0  ;;  %v785_v10 = vld [vmem:[#allocation8 + $0x38] sm:$0xff]   ;;  %v788_v13 = vld [vmem:[#allocation8 + $0x20] sm:$0xff]   ;;  %v790_v15 = vld [vmem:[#allocation8 + $0x10] sm:$0xff]   ;;  %v386_v22 = vsub.s32 0, %v385_v19  ;;  %p876_p3 = scmp.ne.s32.totalorder %s1129_s29, %s875_s14  ;;  %p1191_p11 = scmp.ne.s32.totalorder %s1185_s23, 0 }
  0x5a   : > { %687 = vmatpush3.bf16.msra.mxu1 %v785_v10  ;;  %v789_v14 = vld [vmem:[#allocation8 + $0x18] sm:$0xff]   ;;  %v791_v16 = vld [vmem:[#allocation8 + $0x8] sm:$0xff]   ;;  %v792_v17 = vld [vmem:[#allocation8] sm:$0xff]   ;;  %s952_s22 = smov [#allocation9]  }
  0x5b   : > { %688 = vmatprep.subr.bf16.mxu1 %v950_v0  ;;  %v380_v20 = vld [vmem:[%s1172_s2] sm:$0x1]  ;;  %p877_p1 = pnand %p876_p3, %p1191_p11  ;;  %s879_s16 = sshll.u32 %s952_s22, 4  ;;  %s880_s16 = int_to_ptr.vmem [resolvable:$false] %s879_s16 }
  0x5c   : > { %669 = vmatpush3.bf16.msra.mxu0 %v778_v2  ;;  %v382_v21 = vpack.i.b16 %v380_v20, %v380_v20  ;;  %v643_v38 = vld [vmem:[%s1174_s4] ss:$0 sm:$0xff]  ;;  %s881_s17 = scalar_lea.vmem %s880_s16, 256  ;;  %p882_p6 = scmp.lt.s32.totalorder %s1129_s29, %s880_s16 }
  0x5d   : > { %670 = vmatprep.subr.bf16.mxu0 %v950_v0  ;;  %p878_p2 = pneg %p877_p1  ;;  %p883_p12 = scmp.lt.s32.totalorder %s881_s17, %s875_s14 }
  0x5e   : > { %689 = vmatpush3.bf16.msra.mxu1 %v786_v11  ;;  %v387_v23 = vrot.slane %v382_v21, %v386_v22 }
  0x5f   : > { %690 = vmatprep.subr.bf16.mxu1 %v950_v0  ;;  %p884_p7 = por %p883_p12, %p882_p6 }
  0x60   : > { %671 = vmatpush3.bf16.msra.mxu0 %v779_v3 }
  0x61   : > { %672 = vmatprep.subr.bf16.mxu0 %v950_v0  ;;  %p885_p9 = pnand %p884_p7, %p878_p2 }
  0x62   : > { %691 = vmatpush3.bf16.msra.mxu1 %v787_v12 }
  0x63   : > { %692 = vmatprep.subr.bf16.mxu1 %v950_v0 }
  0x64   : > { %673 = vmatpush3.bf16.msra.mxu0 %v780_v4 }
  0x65   : > { %674 = vmatprep.subr.bf16.mxu0 %v950_v0 }
  0x66   : > { %693 = vmatpush3.bf16.msra.mxu1 %v788_v13 }
  0x67   : > { %694 = vmatprep.subr.bf16.mxu1 %v950_v0 }
  0x68   : > { %675 = vmatpush3.bf16.msra.mxu0 %v781_v5 }
  0x69   : > { %676 = vmatprep.subr.bf16.mxu0 %v950_v0 }
  0x6a   : > { %695 = vmatpush3.bf16.msra.mxu1 %v789_v14 }
  0x6b   : > { %696 = vmatprep.subr.bf16.mxu1 %v950_v0 }
  0x6c   : > { %677 = vmatpush3.bf16.msra.mxu0 %v782_v6 }
  0x6d   : > { %678 = vmatprep.subr.bf16.mxu0 %v950_v0 }
  0x6e   : > { %697 = vmatpush3.bf16.msra.mxu1 %v790_v15 }
  0x6f   : > { %698 = vmatprep.subr.bf16.mxu1 %v950_v0 }
  0x70   : > { %679 = vmatpush3.bf16.msra.mxu0 %v783_v7 }
  0x71   : > { %680 = vmatprep.subr.bf16.mxu0 %v950_v0 }
  0x72   : > { %699 = vmatpush3.bf16.msra.mxu1 %v791_v16 }
  0x73   : > { %700 = vmatprep.subr.bf16.mxu1 %v950_v0 }
  0x74   : > { %681 = vmatpush3.bf16.msra.mxu0 %v784_v8 }
  0x76   : > { %701 = vmatpush3.bf16.msra.mxu1 %v792_v17 }
  0x77   : > { %683 = vmatmul.mubr.bf16.vlgmr.msra.gmra.mxu0 %v274_v9 }
 0x137   : > { %v373_v24 = vpop.f32.mrf.mxu0 }
 0x138   : > { %v379_v25 = vpack.c.bf16 %v373_v24, %v373_v24 }
 0x139   : > { %v684_v26 = vpop.f32.mrf.mxu0 }
 0x13a   : > { %v388_v27 = vadd.bf16 %v387_v23, %v379_v25 }
 0x13b   : > { %v376_v28 = vpop.f32.mrf.mxu0 }
 0x13c   : > { %v389_v29 = vmul.bf16 %v388_v27, %v388_v27  ;;  %v393_v35 = vmul.bf16 1056980736, %v388_v27 }
 0x13d   : > { %v685_v30 = vpop.f32.mrf.mxu0 }
 0x13e   : > { %v390_v31 = vmul.bf16 1024605458, %v389_v29 }
 0x140   : > { %v391_v32 = vadd.bf16 1061961548, %v390_v31 }
 0x142   : > { %v392_v33 = vmul.bf16 %v391_v32, %v388_v27 }
 0x144   : > { %793 = vtanh.bf16 %v392_v33 }
 0x152   : > { %v794_v34 = vpop.eup %793 }
 0x153   : > { %v395_v36 = vadd.bf16 1065369472, %v794_v34 }
 0x155   : > { %v396_v37 = vmul.bf16 %v395_v36, %v393_v35 }
 0x157   : > { %703 = vmatmul.mubr.bf16.vlgmr.msra.gmra.mxu1 %v396_v37 }
 0x217   : > { %v495_v39 = vpop.f32.mrf.mxu1 }
 0x218   : > { %v510_v40 = vadd.f32 %v643_v38, %v495_v39 }
 0x219   : > { %v704_v41 = vpop.f32.mrf.mxu1 }
 0x21a   : > { %511 = vst [vmem:[%s268_s30] sm:$0xff] %v510_v40 }
 0x21b   : > { %v498_v42 = vpop.f32.mrf.mxu1 }
 0x21c   : > { %888 = shalt.err (!%p885_p9)
}
 0x21d   : > { %s889_s24 = scalar_lea.hbm %s1127_s7, 128  ;;  %s893_s8 = scalar_lea.hbm %s1175_s5, 256 }
 0x21e   : > { %p890_p13 = scmp.ne.s32.totalorder %s1127_s7, %s889_s24  ;;  %p894_p0 = scmp.lt.s32.totalorder %s1127_s7, %s1175_s5 }
 0x21f   : > { %p895_p4 = scmp.lt.s32.totalorder %s893_s8, %s889_s24 }
 0x220   : > { %p891_p5 = pnand %p890_p13, %p1191_p11 }
 0x221   : > { %p896_p8 = por %p895_p4, %p894_p0 }
 0x222   : > { %p892_p10 = pneg %p891_p5 }
 0x224   : > { %p897_p3 = pnand %p896_p8, %p892_p10 }
 0x226   : > { %900 = shalt.err (!%p897_p3)
}
 0x227   : > { %716 = dma.vmem_to_hbm [thread:$0]  (%p1191_p11), %s1129_s29, 128, %s1127_s7, %s513_s9   ;;  %v705_v43 = vpop.f32.mrf.mxu1 }
 0x228 PF: > { %s538_s12 = sand.u32 1, %s931_s18   ;;  %p1192_p1 = scmp.ne.s32.totalorder %s1181_s25, 0 }
 0x229   : > { %p1193_p2 = scmp.ge.s32.totalorder %s943_s21, 2  ;;  %s539_s30 = scalar_lea.sflag [#allocation5], %s538_s12 }
 0x22b   : > { %p730_p6 = pnand %p1193_p2, %p1192_p1 }
 0x22d   : > { %p731_p12 = pneg %p730_p6 }
 0x22f   : > { %926 = dma.done.wait (%p731_p12), %s539_s30, 128  }
 0x230   : > { %928 = vsyncadd (%p731_p12), %s539_s30, 4294967168  ;;  %p19_p7 = scmp.ge.s32.totalorder %s1055_s15, 4   ;;  %s1194_s18 = smov %s935_s19 }
 0x231   : > { %s1195_s19 = smov %s939_s20  ;;  %s1196_s20 = smov %s1071_s27 }
 0x232   : > { %s1197_s21 = smov %s1055_s15  ;;  %21 = sbr.rel (!%p19_p7) target bundleno = 6 (0x6), region = 93 }
 0x237   :  { %544 = vsyncpa [#allocation4], 1 }
 0x238   :  { %546 = vsyncpa [#allocation4 + $0x1], 1 }
 0x239   :  { %547 = vsyncpa [#allocation7], 1 }
 0x23a   :  { %548 = vsyncpa [#allocation5], 1 }
 0x23b   :  { %550 = vsyncpa [#allocation5 + $0x1], 1 }

</bundles_post_ra>
